<compile_context>
chip_gen: v5e
topology: v5e:2x2
jax: 0.10.0
libtpu: 0.0.40
codegen_flags: <defaults>
</compile_context>

<pallas_src>
import functools
import math

import jax
import jax.numpy as jnp
from jax.experimental import pallas as pl
from jax.experimental.pallas import tpu as pltpu

EPS = 1e-06
_HALF_LOG_2PI = 0.5 * math.log(2.0 * math.pi)
_SQRT_2_OVER_PI = math.sqrt(2.0 / math.pi)


def _gelu(x, approximate):
    # F.gelu default == exact (erf) GELU.  The tanh approximation runs on the
    # otherwise-idle EUP slot instead of a long VPU erf polynomial; max abs
    # error ~1e-3.  Exact parity with PyTorch is one flag away.
    if approximate:
        return 0.5 * x * (1.0 + jnp.tanh(_SQRT_2_OVER_PI * (x + 0.044715 * x * x * x)))
    return 0.5 * x * (1.0 + jax.lax.erf(x * (1.0 / math.sqrt(2.0))))


def _round_up(x, m):
    return ((x + m - 1) // m) * m


def actor_kernel(
    state_ref,
    w1_ref, b1_ref,
    w2_ref, b2_ref,
    w3_ref, b3_ref,
    wo_ref, bo_ref,      # fused fc_out: (H, 2A) weight, (1, 2A) bias
    eps_ref,             # standard-normal noise for rsample
    out_ref,             # packed (TB, 3*LP): [action | log_prob | action_mean]
    *,
    action_size,
    lane_pad,
    approximate_gelu,
):
    mm_dtype = w1_ref.dtype  # bf16 operands -> single-pass MXU; f32 accumulation.

    def dense(x, w_ref, b_ref):
        return jnp.dot(x.astype(mm_dtype), w_ref[...],
                       preferred_element_type=jnp.float32) + b_ref[...]

    x = state_ref[...]
    h = _gelu(dense(x, w1_ref, b1_ref), approximate_gelu)
    h = _gelu(dense(h, w2_ref, b2_ref), approximate_gelu)
    h = _gelu(dense(h, w3_ref, b3_ref), approximate_gelu)

    # Single fused head matmul (one MXU pass for both mean and log_std columns).
    y = dense(h, wo_ref, bo_ref)

    A = action_size
    action_mean = y[:, :A]
    log_std = jnp.clip(y[:, A:2 * A], -20.0, 0.5)
    std = jnp.exp(log_std)                    # exp -> EUP slot

    # rsample: mean + std * eps
    eps = eps_ref[...]
    normal_sample = action_mean + std * eps
    action = jnp.tanh(normal_sample)          # tanh -> EUP slot

    # Normal(mean, std).log_prob(normal_sample): (x - mean)/std == eps exactly,
    # so no subtract/divide is needed.
    normal_logprob = -0.5 * (eps * eps) - log_std - _HALF_LOG_2PI
    log_prob = normal_logprob - jnp.log(1.0 - action * action + EPS)

    # Three static stores at 128-lane-aligned field offsets (no lane-axis
    # concatenate / cross-lane relayout).  Unused lanes of the padded slab are
    # never read by the wrapper.
    LP = lane_pad
    out_ref[:, 0:A] = action
    out_ref[:, LP:LP + A] = log_prob
    out_ref[:, 2 * LP:2 * LP + A] = action_mean


def actor_forward(state, params, eps, *, use_bf16_matmul=True, approximate_gelu=True):
    """state: (B, state_size) f32; eps: (B, action_size) f32 standard normal.

    Returns (action, log_prob, action_mean), each (B, action_size) f32.
    Set use_bf16_matmul=False and approximate_gelu=False for exact f32/erf
    parity with the PyTorch reference (slower: multi-pass MXU + VPU erf).
    """
    B, S = state.shape
    H = params["w1"].shape[1]
    A2 = params["w_out"].shape[1]
    A = A2 // 2
    LP = _round_up(max(A, 128), 128)          # 128-lane-aligned field stride

    mm_dtype = jnp.bfloat16 if use_bf16_matmul else jnp.float32
    w1 = params["w1"].astype(mm_dtype)
    w2 = params["w2"].astype(mm_dtype)
    w3 = params["w3"].astype(mm_dtype)
    wo = params["w_out"].astype(mm_dtype)
    b1, b2, b3, bo = params["b1"], params["b2"], params["b3"], params["b_out"]

    # Batch tiling: whole batch as one tile when small; fixed 512-row tiles
    # (sweepable 256/512/1024) with padding for ragged batches otherwise.
    if B <= 512:
        TB = B
        Bp = B
    else:
        TB = 512
        Bp = _round_up(B, TB)
    grid = (Bp // TB,)
    if Bp != B:
        pad = Bp - B
        state = jnp.pad(state, ((0, pad), (0, 0)))
        eps = jnp.pad(eps, ((0, pad), (0, 0)))
    # TODO(synk): on v7x, split small batches into >=2 row tiles (multiple of 8)
    # so the second TensorCore gets work; skipped here to avoid pure per-step
    # overhead on single-TC v5e/v6e.
    # TODO(synk): for very large H (>= ~2048 bf16) the two HxH weights no longer
    # fit v7x's 64 MiB VMEM resident -> K-tile fc2/fc3 with a nested pipeline.

    def _resident(shape):
        # Same block every grid step -> single-buffered, VMEM-resident.
        return pl.BlockSpec(shape, lambda i: (0, 0), pipeline_mode=pl.Buffered(1))

    in_specs = [
        pl.BlockSpec((TB, S), lambda i: (i, 0)),     # state, tiled over batch
        _resident((S, H)), _resident((1, H)),        # fc1
        _resident((H, H)), _resident((1, H)),        # fc2
        _resident((H, H)), _resident((1, H)),        # fc3
        _resident((H, A2)), _resident((1, A2)),      # fc_out (fused head)
        pl.BlockSpec((TB, A), lambda i: (i, 0)),     # eps, tiled over batch
    ]
    out_specs = pl.BlockSpec((TB, 3 * LP), lambda i: (i, 0))
    out_shape = jax.ShapeDtypeStruct((Bp, 3 * LP), jnp.float32)

    # Scoped-VMEM budget: resident weights (single buffer) + double-buffered
    # streamed tiles + activation slack; clamped to stay safe on v7x (64 MiB).
    w_itemsize = 2 if use_bf16_matmul else 4
    weight_bytes = (S * H + 2 * H * H + H * A2) * w_itemsize + (3 * H + A2) * 4
    tile_bytes = 2 * (TB * S + TB * A + TB * 3 * LP) * 4
    act_bytes = 6 * TB * H * 4
    vmem_limit = int(min(max(1.5 * (weight_bytes + tile_bytes + act_bytes) + (8 << 20),
                             32 << 20), 64 << 20))

    flops = 2 * Bp * (S * H + 2 * H * H + H * A2)
    bytes_accessed = weight_bytes + 4 * (Bp * S + Bp * A + Bp * 3 * LP)
    cost = pl.CostEstimate(flops=int(flops),
                           transcendentals=int(Bp * (3 * H + 3 * A)),
                           bytes_accessed=int(bytes_accessed))

    packed = pl.pallas_call(
        functools.partial(actor_kernel, action_size=A, lane_pad=LP,
                          approximate_gelu=approximate_gelu),
        out_shape=out_shape,
        grid=grid,
        in_specs=in_specs,
        out_specs=out_specs,
        compiler_params=pltpu.CompilerParams(
            dimension_semantics=("parallel",),      # both TCs on v7x when grid > 1
            vmem_limit_bytes=vmem_limit,
        ),
        cost_estimate=cost,
    )(
        state,
        w1, b1, w2, b2, w3, b3, wo, bo,
        eps,
    )

    action = packed[:B, :A]
    log_prob = packed[:B, LP:LP + A]
    action_mean = packed[:B, 2 * LP:2 * LP + A]
    return action, log_prob, action_mean


def actor_reference(state, params, eps, approximate_gelu=True):
    """Pure-JAX f32 reference of the Actor forward (for correctness checks)."""
    def gelu(x):
        return _gelu(x, approximate_gelu)
    h = gelu(state @ params["w1"] + params["b1"])
    h = gelu(h @ params["w2"] + params["b2"])
    h = gelu(h @ params["w3"] + params["b3"])
    y = h @ params["w_out"] + params["b_out"]
    A = params["w_out"].shape[1] // 2
    mean = y[:, :A]
    log_std = jnp.clip(y[:, A:], -20.0, 0.5)
    std = jnp.exp(log_std)
    ns = mean + std * eps
    action = jnp.tanh(ns)
    z = (ns - mean) / std
    log_prob = (-0.5 * z * z - log_std - _HALF_LOG_2PI
                - jnp.log(1.0 - action * action + EPS))
    return action, log_prob, mean


def _xavier_uniform(key, fan_in, fan_out):
    limit = math.sqrt(6.0 / (fan_in + fan_out))
    return jax.random.uniform(
        key, (fan_in, fan_out), dtype=jnp.float32, minval=-limit, maxval=limit
    )


def init_actor_params(key, state_size, action_size, hidden_size):
    ks = jax.random.split(key, 4)
    b = lambda n: jnp.zeros((1, n), dtype=jnp.float32)
    return {
        "w1": _xavier_uniform(ks[0], state_size, hidden_size), "b1": b(hidden_size),
        "w2": _xavier_uniform(ks[1], hidden_size, hidden_size), "b2": b(hidden_size),
        "w3": _xavier_uniform(ks[2], hidden_size, hidden_size), "b3": b(hidden_size),
        # Single fc_out like PyTorch: columns [:A] -> mean, [A:] -> log_std
        # (matches torch.chunk(y, 2, dim=-1)).
        "w_out": _xavier_uniform(ks[3], hidden_size, action_size * 2),
        "b_out": b(action_size * 2),
    }


if __name__ == "__main__":
    batch = 8
    state_size = 16
    action_size = 4
    hidden_size = 32

    key = jax.random.PRNGKey(0)
    k_params, k_state, k_eps, k_state2, k_eps2 = jax.random.split(key, 5)

    params = init_actor_params(k_params, state_size, action_size, hidden_size)
    state = jax.random.normal(k_state, (batch, state_size), dtype=jnp.float32)
    eps = jax.random.normal(k_eps, (batch, action_size), dtype=jnp.float32)

    # 1) Default fast config: bf16 MXU operands + tanh-approx GELU.
    action, log_prob, action_mean = actor_forward(state, params, eps)
    jax.block_until_ready((action, log_prob, action_mean))
    assert action.shape == (batch, action_size)
    assert log_prob.shape == (batch, action_size)
    assert action_mean.shape == (batch, action_size)
    assert bool(jnp.all(jnp.isfinite(action)))
    assert bool(jnp.all(jnp.isfinite(log_prob)))
    assert bool(jnp.all(jnp.isfinite(action_mean)))
    assert bool(jnp.all(jnp.abs(action) <= 1.0))

    # 2) f32-matmul config checked against the pure-JAX reference (same GELU).
    a32, lp32, m32 = actor_forward(state, params, eps, use_bf16_matmul=False)
    ra, rlp, rm = actor_reference(state, params, eps, approximate_gelu=True)
    jax.block_until_ready((a32, lp32, m32))
    assert bool(jnp.allclose(a32, ra, atol=1e-4, rtol=1e-4))
    assert bool(jnp.allclose(lp32, rlp, atol=1e-4, rtol=1e-4))
    assert bool(jnp.allclose(m32, rm, atol=1e-4, rtol=1e-4))

    # 3) Ragged large batch exercises the cdiv grid + wrapper padding path.
    batch2 = 700
    state2 = jax.random.normal(k_state2, (batch2, state_size), dtype=jnp.float32)
    eps2 = jax.random.normal(k_eps2, (batch2, action_size), dtype=jnp.float32)
    a2, lp2, m2 = actor_forward(state2, params, eps2)
    jax.block_until_ready((a2, lp2, m2))
    assert a2.shape == (batch2, action_size)
    assert lp2.shape == (batch2, action_size)
    assert m2.shape == (batch2, action_size)
    assert bool(jnp.all(jnp.isfinite(a2)))
    assert bool(jnp.all(jnp.isfinite(lp2)))

    print("KERNEL_OK")
</pallas_src>

<mosaic_0001>
module attributes {stable_mosaic.version = 11 : i64} {
  func.func @actor_kernel(%arg0: i32, %arg1: memref<8x16xf32, #tpu.memory_space<vmem>>, %arg2: memref<16x32xbf16, #tpu.memory_space<vmem>>, %arg3: memref<1x32xf32, #tpu.memory_space<vmem>>, %arg4: memref<32x32xbf16, #tpu.memory_space<vmem>>, %arg5: memref<1x32xf32, #tpu.memory_space<vmem>>, %arg6: memref<32x32xbf16, #tpu.memory_space<vmem>>, %arg7: memref<1x32xf32, #tpu.memory_space<vmem>>, %arg8: memref<32x8xbf16, #tpu.memory_space<vmem>>, %arg9: memref<1x8xf32, #tpu.memory_space<vmem>>, %arg10: memref<8x4xf32, #tpu.memory_space<vmem>>, %arg11: memref<8x384xf32, #tpu.memory_space<vmem>>) attributes {dimension_semantics = [#tpu.dimension_semantics<parallel>], iteration_bounds = array<i64: 1>, scalar_prefetch = 0 : i64, scratch_operands = 0 : i64, tpu.core_type = #tpu.core_type<tc>, window_params = [{transform_indices = @transform_0, window_bounds = array<i64: 8, 16>}, {pipeline_mode = #tpu.pipeline_mode<synchronous>, transform_indices = @transform_1, window_bounds = array<i64: 16, 32>}, {pipeline_mode = #tpu.pipeline_mode<synchronous>, transform_indices = @transform_2, window_bounds = array<i64: 1, 32>}, {pipeline_mode = #tpu.pipeline_mode<synchronous>, transform_indices = @transform_3, window_bounds = array<i64: 32, 32>}, {pipeline_mode = #tpu.pipeline_mode<synchronous>, transform_indices = @transform_4, window_bounds = array<i64: 1, 32>}, {pipeline_mode = #tpu.pipeline_mode<synchronous>, transform_indices = @transform_5, window_bounds = array<i64: 32, 32>}, {pipeline_mode = #tpu.pipeline_mode<synchronous>, transform_indices = @transform_6, window_bounds = array<i64: 1, 32>}, {pipeline_mode = #tpu.pipeline_mode<synchronous>, transform_indices = @transform_7, window_bounds = array<i64: 32, 8>}, {pipeline_mode = #tpu.pipeline_mode<synchronous>, transform_indices = @transform_8, window_bounds = array<i64: 1, 8>}, {transform_indices = @transform_9, window_bounds = array<i64: 8, 4>}, {transform_indices = @transform_10, window_bounds = array<i64: 8, 384>}]} {
    %c0 = arith.constant 0 : index
    %c0_0 = arith.constant 0 : index
    %0 = vector.load %arg1[%c0, %c0_0] : memref<8x16xf32, #tpu.memory_space<vmem>>, vector<8x16xf32>
    %1 = arith.truncf %0 : vector<8x16xf32> to vector<8x16xbf16>
    %c0_1 = arith.constant 0 : index
    %c0_2 = arith.constant 0 : index
    %2 = vector.load %arg2[%c0_1, %c0_2] : memref<16x32xbf16, #tpu.memory_space<vmem>>, vector<16x32xbf16>
    %cst = arith.constant dense<0.000000e+00> : vector<8x32xf32>
    %3 = tpu.matmul %1, %2, %cst {dimension_numbers = #tpu.dot_dimension_numbers<[1], [0], [0], [1], [0, 0, 1, 1], [], []>} : vector<8x16xbf16>, vector<16x32xbf16>, vector<8x32xf32> -> vector<8x32xf32>
    %c0_3 = arith.constant 0 : index
    %c0_4 = arith.constant 0 : index
    %4 = vector.load %arg3[%c0_3, %c0_4] : memref<1x32xf32, #tpu.memory_space<vmem>>, vector<1x32xf32>
    %5 = vector.broadcast %4 : vector<1x32xf32> to vector<8x32xf32>
    %6 = arith.addf %3, %5 : vector<8x32xf32>
    %cst_5 = arith.constant 5.000000e-01 : f32
    %7 = vector.broadcast %cst_5 : f32 to vector<8x32xf32>
    %8 = arith.mulf %7, %6 : vector<8x32xf32>
    %cst_6 = arith.constant 4.471500e-02 : f32
    %9 = vector.broadcast %cst_6 : f32 to vector<8x32xf32>
    %10 = arith.mulf %9, %6 : vector<8x32xf32>
    %11 = arith.mulf %10, %6 : vector<8x32xf32>
    %12 = arith.mulf %11, %6 : vector<8x32xf32>
    %13 = arith.addf %6, %12 : vector<8x32xf32>
    %cst_7 = arith.constant 0.797884583 : f32
    %14 = vector.broadcast %cst_7 : f32 to vector<8x32xf32>
    %15 = arith.mulf %14, %13 : vector<8x32xf32>
    %16 = math.tanh %15 : vector<8x32xf32>
    %cst_8 = arith.constant 1.000000e+00 : f32
    %17 = vector.broadcast %cst_8 : f32 to vector<8x32xf32>
    %18 = arith.addf %17, %16 : vector<8x32xf32>
    %19 = arith.mulf %8, %18 : vector<8x32xf32>
    %20 = arith.truncf %19 : vector<8x32xf32> to vector<8x32xbf16>
    %c0_9 = arith.constant 0 : index
    %c0_10 = arith.constant 0 : index
    %21 = vector.load %arg4[%c0_9, %c0_10] : memref<32x32xbf16, #tpu.memory_space<vmem>>, vector<32x32xbf16>
    %cst_11 = arith.constant dense<0.000000e+00> : vector<8x32xf32>
    %22 = tpu.matmul %20, %21, %cst_11 {dimension_numbers = #tpu.dot_dimension_numbers<[1], [0], [0], [1], [0, 0, 1, 1], [], []>} : vector<8x32xbf16>, vector<32x32xbf16>, vector<8x32xf32> -> vector<8x32xf32>
    %c0_12 = arith.constant 0 : index
    %c0_13 = arith.constant 0 : index
    %23 = vector.load %arg5[%c0_12, %c0_13] : memref<1x32xf32, #tpu.memory_space<vmem>>, vector<1x32xf32>
    %24 = vector.broadcast %23 : vector<1x32xf32> to vector<8x32xf32>
    %25 = arith.addf %22, %24 : vector<8x32xf32>
    %cst_14 = arith.constant 5.000000e-01 : f32
    %26 = vector.broadcast %cst_14 : f32 to vector<8x32xf32>
    %27 = arith.mulf %26, %25 : vector<8x32xf32>
    %cst_15 = arith.constant 4.471500e-02 : f32
    %28 = vector.broadcast %cst_15 : f32 to vector<8x32xf32>
    %29 = arith.mulf %28, %25 : vector<8x32xf32>
    %30 = arith.mulf %29, %25 : vector<8x32xf32>
    %31 = arith.mulf %30, %25 : vector<8x32xf32>
    %32 = arith.addf %25, %31 : vector<8x32xf32>
    %cst_16 = arith.constant 0.797884583 : f32
    %33 = vector.broadcast %cst_16 : f32 to vector<8x32xf32>
    %34 = arith.mulf %33, %32 : vector<8x32xf32>
    %35 = math.tanh %34 : vector<8x32xf32>
    %cst_17 = arith.constant 1.000000e+00 : f32
    %36 = vector.broadcast %cst_17 : f32 to vector<8x32xf32>
    %37 = arith.addf %36, %35 : vector<8x32xf32>
    %38 = arith.mulf %27, %37 : vector<8x32xf32>
    %39 = arith.truncf %38 : vector<8x32xf32> to vector<8x32xbf16>
    %c0_18 = arith.constant 0 : index
    %c0_19 = arith.constant 0 : index
    %40 = vector.load %arg6[%c0_18, %c0_19] : memref<32x32xbf16, #tpu.memory_space<vmem>>, vector<32x32xbf16>
    %cst_20 = arith.constant dense<0.000000e+00> : vector<8x32xf32>
    %41 = tpu.matmul %39, %40, %cst_20 {dimension_numbers = #tpu.dot_dimension_numbers<[1], [0], [0], [1], [0, 0, 1, 1], [], []>} : vector<8x32xbf16>, vector<32x32xbf16>, vector<8x32xf32> -> vector<8x32xf32>
    %c0_21 = arith.constant 0 : index
    %c0_22 = arith.constant 0 : index
    %42 = vector.load %arg7[%c0_21, %c0_22] : memref<1x32xf32, #tpu.memory_space<vmem>>, vector<1x32xf32>
    %43 = vector.broadcast %42 : vector<1x32xf32> to vector<8x32xf32>
    %44 = arith.addf %41, %43 : vector<8x32xf32>
    %cst_23 = arith.constant 5.000000e-01 : f32
    %45 = vector.broadcast %cst_23 : f32 to vector<8x32xf32>
    %46 = arith.mulf %45, %44 : vector<8x32xf32>
    %cst_24 = arith.constant 4.471500e-02 : f32
    %47 = vector.broadcast %cst_24 : f32 to vector<8x32xf32>
    %48 = arith.mulf %47, %44 : vector<8x32xf32>
    %49 = arith.mulf %48, %44 : vector<8x32xf32>
    %50 = arith.mulf %49, %44 : vector<8x32xf32>
    %51 = arith.addf %44, %50 : vector<8x32xf32>
    %cst_25 = arith.constant 0.797884583 : f32
    %52 = vector.broadcast %cst_25 : f32 to vector<8x32xf32>
    %53 = arith.mulf %52, %51 : vector<8x32xf32>
    %54 = math.tanh %53 : vector<8x32xf32>
    %cst_26 = arith.constant 1.000000e+00 : f32
    %55 = vector.broadcast %cst_26 : f32 to vector<8x32xf32>
    %56 = arith.addf %55, %54 : vector<8x32xf32>
    %57 = arith.mulf %46, %56 : vector<8x32xf32>
    %58 = arith.truncf %57 : vector<8x32xf32> to vector<8x32xbf16>
    %c0_27 = arith.constant 0 : index
    %c0_28 = arith.constant 0 : index
    %59 = vector.load %arg8[%c0_27, %c0_28] : memref<32x8xbf16, #tpu.memory_space<vmem>>, vector<32x8xbf16>
    %cst_29 = arith.constant dense<0.000000e+00> : vector<8x8xf32>
    %60 = tpu.matmul %58, %59, %cst_29 {dimension_numbers = #tpu.dot_dimension_numbers<[1], [0], [0], [1], [0, 0, 1, 1], [], []>} : vector<8x32xbf16>, vector<32x8xbf16>, vector<8x8xf32> -> vector<8x8xf32>
    %c0_30 = arith.constant 0 : index
    %c0_31 = arith.constant 0 : index
    %61 = vector.load %arg9[%c0_30, %c0_31] : memref<1x8xf32, #tpu.memory_space<vmem>>, vector<1x8xf32>
    %62 = vector.broadcast %61 : vector<1x8xf32> to vector<8x8xf32>
    %63 = arith.addf %60, %62 : vector<8x8xf32>
    %64 = vector.extract_strided_slice %63 {offsets = [0, 0], sizes = [8, 4], strides = [1, 1]} : vector<8x8xf32> to vector<8x4xf32>
    %65 = vector.extract_strided_slice %63 {offsets = [0, 4], sizes = [8, 4], strides = [1, 1]} : vector<8x8xf32> to vector<8x4xf32>
    %cst_32 = arith.constant -2.000000e+01 : f32
    %cst_33 = arith.constant 5.000000e-01 : f32
    %66 = vector.broadcast %cst_32 : f32 to vector<8x4xf32>
    %67 = arith.maximumf %66, %65 : vector<8x4xf32>
    %68 = vector.broadcast %cst_33 : f32 to vector<8x4xf32>
    %69 = arith.minimumf %68, %67 : vector<8x4xf32>
    %70 = math.exp %69 : vector<8x4xf32>
    %c0_34 = arith.constant 0 : index
    %c0_35 = arith.constant 0 : index
    %71 = vector.load %arg10[%c0_34, %c0_35] : memref<8x4xf32, #tpu.memory_space<vmem>>, vector<8x4xf32>
    %72 = arith.mulf %70, %71 : vector<8x4xf32>
    %73 = arith.addf %64, %72 : vector<8x4xf32>
    %74 = math.tanh %73 : vector<8x4xf32>
    %75 = arith.mulf %71, %71 : vector<8x4xf32>
    %cst_36 = arith.constant -5.000000e-01 : f32
    %76 = vector.broadcast %cst_36 : f32 to vector<8x4xf32>
    %77 = arith.mulf %76, %75 : vector<8x4xf32>
    %78 = arith.subf %77, %69 : vector<8x4xf32>
    %cst_37 = arith.constant 0.918938517 : f32
    %79 = vector.broadcast %cst_37 : f32 to vector<8x4xf32>
    %80 = arith.subf %78, %79 : vector<8x4xf32>
    %81 = arith.mulf %74, %74 : vector<8x4xf32>
    %cst_38 = arith.constant 1.000000e+00 : f32
    %82 = vector.broadcast %cst_38 : f32 to vector<8x4xf32>
    %83 = arith.subf %82, %81 : vector<8x4xf32>
    %cst_39 = arith.constant 9.99999997E-7 : f32
    %84 = vector.broadcast %cst_39 : f32 to vector<8x4xf32>
    %85 = arith.addf %83, %84 : vector<8x4xf32>
    %86 = math.log %85 : vector<8x4xf32>
    %87 = arith.subf %80, %86 : vector<8x4xf32>
    %c0_40 = arith.constant 0 : index
    %c0_41 = arith.constant 0 : index
    %88 = vector.load %arg11[%c0_40, %c0_41] : memref<8x384xf32, #tpu.memory_space<vmem>>, vector<8x4xf32>
    tpu.vector_store %arg11[%c0_40, %c0_41], %74 {strides = array<i32>} : memref<8x384xf32, #tpu.memory_space<vmem>>, vector<8x4xf32>,
    %c0_42 = arith.constant 0 : index
    %c128 = arith.constant 128 : index
    %89 = vector.load %arg11[%c0_42, %c128] : memref<8x384xf32, #tpu.memory_space<vmem>>, vector<8x4xf32>
    tpu.vector_store %arg11[%c0_42, %c128], %87 {strides = array<i32>} : memref<8x384xf32, #tpu.memory_space<vmem>>, vector<8x4xf32>,
    %c0_43 = arith.constant 0 : index
    %c256 = arith.constant 256 : index
    %90 = vector.load %arg11[%c0_43, %c256] : memref<8x384xf32, #tpu.memory_space<vmem>>, vector<8x4xf32>
    tpu.vector_store %arg11[%c0_43, %c256], %64 {strides = array<i32>} : memref<8x384xf32, #tpu.memory_space<vmem>>, vector<8x4xf32>,
    return
  }
  func.func @transform_0(%arg0: i32) -> (i32, i32) {
    %c0_i32 = arith.constant 0 : i32
    %c0_i32_0 = arith.constant 0 : i32
    return %arg0, %c0_i32 : i32, i32
  }
  func.func @transform_1(%arg0: i32) -> (i32, i32) {
    %c0_i32 = arith.constant 0 : i32
    %c0_i32_0 = arith.constant 0 : i32
    %c0_i32_1 = arith.constant 0 : i32
    return %c0_i32, %c0_i32_0 : i32, i32
  }
  func.func @transform_2(%arg0: i32) -> (i32, i32) {
    %c0_i32 = arith.constant 0 : i32
    %c0_i32_0 = arith.constant 0 : i32
    %c0_i32_1 = arith.constant 0 : i32
    return %c0_i32, %c0_i32_0 : i32, i32
  }
  func.func @transform_3(%arg0: i32) -> (i32, i32) {
    %c0_i32 = arith.constant 0 : i32
    %c0_i32_0 = arith.constant 0 : i32
    %c0_i32_1 = arith.constant 0 : i32
    return %c0_i32, %c0_i32_0 : i32, i32
  }
  func.func @transform_4(%arg0: i32) -> (i32, i32) {
    %c0_i32 = arith.constant 0 : i32
    %c0_i32_0 = arith.constant 0 : i32
    %c0_i32_1 = arith.constant 0 : i32
    return %c0_i32, %c0_i32_0 : i32, i32
  }
  func.func @transform_5(%arg0: i32) -> (i32, i32) {
    %c0_i32 = arith.constant 0 : i32
    %c0_i32_0 = arith.constant 0 : i32
    %c0_i32_1 = arith.constant 0 : i32
    return %c0_i32, %c0_i32_0 : i32, i32
  }
  func.func @transform_6(%arg0: i32) -> (i32, i32) {
    %c0_i32 = arith.constant 0 : i32
    %c0_i32_0 = arith.constant 0 : i32
    %c0_i32_1 = arith.constant 0 : i32
    return %c0_i32, %c0_i32_0 : i32, i32
  }
  func.func @transform_7(%arg0: i32) -> (i32, i32) {
    %c0_i32 = arith.constant 0 : i32
    %c0_i32_0 = arith.constant 0 : i32
    %c0_i32_1 = arith.constant 0 : i32
    return %c0_i32, %c0_i32_0 : i32, i32
  }
  func.func @transform_8(%arg0: i32) -> (i32, i32) {
    %c0_i32 = arith.constant 0 : i32
    %c0_i32_0 = arith.constant 0 : i32
    %c0_i32_1 = arith.constant 0 : i32
    return %c0_i32, %c0_i32_0 : i32, i32
  }
  func.func @transform_9(%arg0: i32) -> (i32, i32) {
    %c0_i32 = arith.constant 0 : i32
    %c0_i32_0 = arith.constant 0 : i32
    return %arg0, %c0_i32 : i32, i32
  }
  func.func @transform_10(%arg0: i32) -> (i32, i32) {
    %c0_i32 = arith.constant 0 : i32
    %c0_i32_0 = arith.constant 0 : i32
    return %arg0, %c0_i32 : i32, i32
  }
}

</mosaic_0001>

<bundles_post_ra>
// kernel: tpu_custom_call.1
= control target key start
LH: loop header
LB: loop body
LE: loop exit
PB: predicated region body
PF: predicated region fallthrough
CT: control target
= control target key end

     0   :  { %15 = vsyncpa [#allocation3], 0  ;;  %s704_s0 = inlined_call_operand.hbm [shape: f32[8,16], index: 0, kind: input, shape index: {}]   ;;  %s705_s1 = inlined_call_operand.hbm [shape: bf16[16,32], index: 1, kind: input, shape index: {}]   ;;  %s706_s2 = inlined_call_operand.hbm [shape: f32[1,32], index: 2, kind: input, shape index: {}]   ;;  %s707_s3 = inlined_call_operand.vmem [shape: bf16[32,32], index: 3, kind: input, shape index: {}]   ;;  %s708_s4 = inlined_call_operand.hbm [shape: f32[1,32], index: 4, kind: input, shape index: {}]   ;;  %s709_s5 = inlined_call_operand.vmem [shape: bf16[32,32], index: 5, kind: input, shape index: {}]   ;;  %s710_s6 = inlined_call_operand.hbm [shape: f32[1,32], index: 6, kind: input, shape index: {}]   ;;  %s711_s7 = inlined_call_operand.vmem [shape: bf16[32,8], index: 7, kind: input, shape index: {}]   ;;  %s712_s8 = inlined_call_operand.hbm [shape: f32[1,8], index: 8, kind: input, shape index: {}]   ;;  %s713_s9 = inlined_call_operand.vmem [shape: f32[8,4], index: 9, kind: input, shape index: {}]   ;;  %s714_s10 = inlined_call_operand.hbm [shape: f32[8,384], index: 10, kind: output, shape index: {}]  }
   0x1   :  { %16 = vsyncpa [#allocation6], 0 }
   0x2   :  { %17 = vsyncpa [#allocation9], 0 }
   0x3   :  { %18 = vsyncpa [#allocation12], 0  ;;  %s35_s15 = sshll.u32 %s705_s1, 4  ;;  %s36_s15 = int_to_ptr.hbm [resolvable:$true] %s35_s15 }
   0x4   :  { %19 = vsyncpa [#allocation4], 0  ;;  %s589_s16 = smov [#allocation5]   ;;  %s62_s20 = sshll.u32 %s708_s4, 4  ;;  %s63_s20 = int_to_ptr.hbm [resolvable:$true] %s62_s20 }
   0x5   :  { %s37_s17 = sshll.u32 %s589_s16, 4  ;;  %s590_s21 = smov 64   ;;  %s38_s17 = int_to_ptr.vmem [resolvable:$true] %s37_s17 }
   0x6   :  { %s591_s22 = smov 4   ;;  %s592_s23 = smov [#allocation8]  }
   0x7   :  { %43 = dma.hbm_to_vmem [thread:$0]  %s36_s15, 128, %s38_s17, [#allocation6], %s590_s21, %s590_s21, %s591_s22  }
   0x8   :  { %s64_s24 = sshll.u32 %s592_s23, 4  ;;  %s25_s1 = sshll.u32 %s704_s0, 4  ;;  %s65_s24 = int_to_ptr.vmem [resolvable:$true] %s64_s24  ;;  %s26_s1 = int_to_ptr.hbm [resolvable:$true] %s25_s1 }
   0x9   :  { %67 = dma.hbm_to_vmem [thread:$0]  %s63_s20, 16, %s65_s24, [#allocation9]  }
   0xa   :  { %s49_s29 = sshll.u32 %s706_s2, 4  ;;  %s593_s30 = smov [#allocation2]   ;;  %s50_s29 = int_to_ptr.hbm [resolvable:$true] %s49_s29 }
   0xb   :  { %s27_s4 = sshll.u32 %s593_s30, 4  ;;  %s594_s11 = smov [#allocation7]   ;;  %s28_s4 = int_to_ptr.vmem [resolvable:$true] %s27_s4 }
   0xc   :  { %30 = dma.hbm_to_vmem [thread:$0]  %s26_s1, 128, %s28_s4, [#allocation3]  }
   0xd   :  { %s51_s12 = sshll.u32 %s594_s11, 4  ;;  %s75_s15 = sshll.u32 %s710_s6, 4  ;;  %s52_s12 = int_to_ptr.vmem [resolvable:$true] %s51_s12  ;;  %s76_s15 = int_to_ptr.hbm [resolvable:$true] %s75_s15 }
   0xe   :  { %54 = dma.hbm_to_vmem [thread:$0]  %s50_s29, 16, %s52_s12, [#allocation6]  }
   0xf   :  { %s88_s17 = sshll.u32 %s712_s8, 4  ;;  %s595_s18 = smov [#allocation10]   ;;  %s89_s17 = int_to_ptr.hbm [resolvable:$true] %s88_s17 }
  0x10   :  { %s77_s2 = sshll.u32 %s595_s18, 4  ;;  %s596_s19 = smov [#allocation11]   ;;  %s78_s2 = int_to_ptr.vmem [resolvable:$true] %s77_s2 }
  0x11   :  { %80 = dma.hbm_to_vmem [thread:$0]  %s76_s15, 16, %s78_s2, [#allocation9]  }
  0x12   :  { %s90_s20 = sshll.u32 %s596_s19, 4  ;;  %s91_s20 = int_to_ptr.vmem [resolvable:$true] %s90_s20 }
  0x13   :  { %93 = dma.hbm_to_vmem [thread:$0]  %s89_s17, 16, %s91_s20, [#allocation12]  }
  0x14   :  { %579 = dma.done.wait [#allocation3], 128  }
  0x15   :  { %580 = vsyncadd [#allocation3], 4294967168 }
  0x16   :  { %581 = dma.done.wait [#allocation6], 144  }
  0x17   :  { %582 = vsyncadd [#allocation6], 4294967152 }
  0x18   :  { %583 = dma.done.wait [#allocation9], 32  }
  0x19   :  { %584 = vsyncadd [#allocation9], 4294967264 }
  0x1a   :  { %585 = dma.done.wait [#allocation12], 16  }
  0x1b   :  { %586 = vsyncadd [#allocation12], 4294967280  ;;  %v378_v0 = vld [vmem:[#allocation5] sm:$0xff]  ;;  %v121_v1 = vld [vmem:[#allocation2] sm:$0xff]  ;;  %vm135_vm0 = vcmask 130048   ;;  %vm182_vm1 = vcmask 261120  }
  0x1c   :  { %v122_v2 = vpack.c.bf16 %v121_v1, %v121_v1  ;;  %146 = vmatpush.bf16.msra.mxu0 %v378_v0  ;;  %v380_v3 = vld [vmem:[%s707_s3 + $0x8] sm:$0xff]  ;;  %v379_v4 = vld [vmem:[%s707_s3] sm:$0xff]  ;;  %v395_v5 = vld [vmem:[#allocation7] ss:$0 sm:$0xff]  ;;  %vm321_vm2 = vcmask 31744   ;;  %s332_s12 = sshll.u32 %s714_s10, 4  ;;  %s333_s12 = int_to_ptr.hbm [resolvable:$true] %s332_s12 }
  0x1d   :  { %192 = vmatpush.bf16.msra.mxu1 %v380_v3  ;;  %v382_v19 = vld [vmem:[%s709_s5 + $0x8] sm:$0xff]  ;;  %v381_v20 = vld [vmem:[%s709_s5] sm:$0xff]  ;;  %v396_v21 = vld [vmem:[#allocation8] ss:$0 sm:$0xff] }
  0x1e   :  { %238 = vmatpush.bf16.msra.mxu2 %v382_v19  ;;  %v384_v35 = vld [vmem:[%s711_s7 + $0x8] sm:$0xff]  ;;  %v383_v36 = vld [vmem:[%s711_s7] sm:$0xff]  ;;  %v397_v38 = vld [vmem:[#allocation10] ss:$0 sm:$0xff]  ;;  %s597_s7 = smov 124  }
  0x1f   :  { %349 = vmatmul.msk.bf16.vlgmr.msra.gmra.mxu0 %vm135_vm0, %v122_v2  ;;  %284 = vmatpush.bf16.msra.mxu3 %v384_v35  ;;  %v295_v37 = vld [vmem:[%s713_s9] sm:$0xff]  ;;  %v398_v52 = vld [vmem:[#allocation11] ss:$0 sm:$0xff]  ;;  %s598_s9 = smov [#allocation13]  }
  0x20   :  { %297 = vrot.lane.b32.xlu0 %v295_v37, %s591_s22  ;;  %v307_v2 = vmul.f32 %v295_v37, %v295_v37  ;;  %s330_s22 = sshll.u32 %s598_s9, 4  ;;  %s331_s22 = int_to_ptr.vmem [resolvable:$true] %s330_s22 }
  0x21   :  { %193 = vmatpush.bf16.msra.mxu1 %v379_v4 }
  0x22   :  { %239 = vmatpush.bf16.msra.mxu2 %v381_v20 }
  0x23   :  { %285 = vmatpush.bf16.msra.mxu3 %v383_v36 }
  0x92   :  { %v298_v59 = vpop.permute.xlu0 %297 }
  0x9c   :  { %v148_v6 = vpop.f32.mrf.mxu0 }
  0x9d   :  { %v149_v7 = vadd.f32 %v395_v5, %v148_v6  ;;  %v308_v5 = vmul.f32 -0.5, %v307_v2 }
  0x9f   :  { %v153_v8 = vmul.f32 0.044715, %v149_v7  ;;  %v152_v15 = vmul.f32 0.5, %v149_v7 }
  0xa1   :  { %v154_v9 = vmul.f32 %v153_v8, %v149_v7 }
  0xa3   :  { %v155_v10 = vmul.f32 %v154_v9, %v149_v7 }
  0xa4   :  { %v150_v11 = vpop.f32.mrf.mxu0 }
  0xa5   :  { %v156_v12 = vadd.f32 %v155_v10, %v149_v7 }
  0xa7   :  { %v157_v13 = vmul.f32 0.7978846, %v156_v12 }
  0xa9   :  { %399 = vtanh.f32 %v157_v13 }
  0xaf   :  { %v400_v14 = vpop.eup %399 }
  0xb0   :  { %v159_v16 = vadd.f32 1.0, %v400_v14 }
  0xb2   :  { %v160_v17 = vmul.f32 %v159_v16, %v152_v15 }
  0xb4   :  { %v161_v18 = vpack.c.bf16 %v160_v17, %v160_v17 }
  0xb6   :  { %358 = vmatmul.msk.bf16.vlgmr.msra.gmra.mxu1 %vm182_vm1, %v161_v18 }
 0x133   :  { %v195_v22 = vpop.f32.mrf.mxu1 }
 0x134   :  { %v196_v23 = vadd.f32 %v396_v21, %v195_v22 }
 0x136   :  { %v200_v24 = vmul.f32 0.044715, %v196_v23  ;;  %v199_v31 = vmul.f32 0.5, %v196_v23 }
 0x138   :  { %v201_v25 = vmul.f32 %v200_v24, %v196_v23 }
 0x13a   :  { %v202_v26 = vmul.f32 %v201_v25, %v196_v23 }
 0x13b   :  { %v197_v27 = vpop.f32.mrf.mxu1 }
 0x13c   :  { %v203_v28 = vadd.f32 %v202_v26, %v196_v23 }
 0x13e   :  { %v204_v29 = vmul.f32 0.7978846, %v203_v28 }
 0x140   :  { %401 = vtanh.f32 %v204_v29 }
 0x146   :  { %v402_v30 = vpop.eup %401 }
 0x147   :  { %v206_v32 = vadd.f32 1.0, %v402_v30 }
 0x149   :  { %v207_v33 = vmul.f32 %v206_v32, %v199_v31 }
 0x14b   :  { %v208_v34 = vpack.c.bf16 %v207_v33, %v207_v33 }
 0x14d   :  { %367 = vmatmul.msk.bf16.vlgmr.msra.gmra.mxu2 %vm182_vm1, %v208_v34 }
 0x1d0   :  { %v241_v39 = vpop.f32.mrf.mxu2 }
 0x1d1   :  { %v242_v40 = vadd.f32 %v397_v38, %v241_v39 }
 0x1d3   :  { %v246_v41 = vmul.f32 0.044715, %v242_v40  ;;  %v245_v48 = vmul.f32 0.5, %v242_v40 }
 0x1d5   :  { %v247_v42 = vmul.f32 %v246_v41, %v242_v40 }
 0x1d7   :  { %v248_v43 = vmul.f32 %v247_v42, %v242_v40 }
 0x1d8   :  { %v243_v44 = vpop.f32.mrf.mxu2 }
 0x1d9   :  { %v249_v45 = vadd.f32 %v248_v43, %v242_v40 }
 0x1db   :  { %v250_v46 = vmul.f32 0.7978846, %v249_v45 }
 0x1dd   :  { %403 = vtanh.f32 %v250_v46 }
 0x1e3   :  { %v404_v47 = vpop.eup %403 }
 0x1e4   :  { %v252_v49 = vadd.f32 1.0, %v404_v47 }
 0x1e6   :  { %v253_v50 = vmul.f32 %v252_v49, %v245_v48 }
 0x1e8   :  { %v254_v51 = vpack.c.bf16 %v253_v50, %v253_v50 }
 0x1ea   :  { %376 = vmatmul.msk.bf16.vlgmr.msra.gmra.mxu3 %vm182_vm1, %v254_v51 }
 0x26d   :  { %v287_v53 = vpop.f32.mrf.mxu3 }
 0x26e   :  { %v288_v54 = vadd.f32 %v398_v52, %v287_v53 }
 0x270   :  { %324 = vst.msk [vmem:[#allocation13 + $0x10] sm:$0xff] %vm321_vm2, %v288_v54  ;;  %v291_v55 = vmax.f32 %v288_v54, -20.0 }
 0x272   :  { %v292_v56 = vmin.f32 %v291_v55, 0.5 }
 0x274   :  { %310 = vrot.lane.b32.xlu1 %v292_v56, %s597_s7  ;;  %v293_v57 = vmul.f32 1.442695, %v292_v56 }
 0x275   :  { %v289_v58 = vpop.f32.mrf.mxu3 }
 0x276   :  { %405 = vpow2.f32 %v293_v57 }
 0x27c   :  { %v406_v60 = vpop.eup %405 }
 0x27d   :  { %v300_v61 = vmul.f32 %v406_v60, %v298_v59 }
 0x27f   :  { %302 = vrot.lane.b32.xlu0 %v300_v61, %s597_s7 }
 0x2e6   :  { %v311_v6 = vpop.permute.xlu1 %310 }
 0x2e7   :  { %v313_v7 = vsub.f32 %v308_v5, %v311_v6 }
 0x2e9   :  { %v377_v9 = vadd.f32 -0.9189385, %v313_v7 }
 0x2f1   :  { %v303_v62 = vpop.permute.xlu0 %302 }
 0x2f2   :  { %v305_v63 = vadd.f32 %v303_v62, %v288_v54 }
 0x2f4   :  { %407 = vtanh.f32 %v305_v63 }
 0x2fa   :  { %v408_v0 = vpop.eup %407 }
 0x2fb   :  { %v315_v1 = vmul.f32 %v408_v0, %v408_v0  ;;  %322 = vst.msk [vmem:[#allocation13] sm:$0xff] %vm321_vm2, %v408_v0 }
 0x2fd   :  { %v316_v3 = vsub.f32 1.0, %v315_v1 }
 0x2ff   :  { %v317_v4 = vadd.f32 1e-06, %v316_v3 }
 0x301   :  { %409 = vlog2.f32 %v317_v4 }
 0x307   :  { %v410_v8 = vpop.eup %409 }
 0x308   :  { %v319_v10 = vmul.f32 0.6931472, %v410_v8 }
 0x30a   :  { %v320_v11 = vsub.f32 %v377_v9, %v319_v10 }
 0x30c   :  { %323 = vst.msk [vmem:[#allocation13 + $0x8] sm:$0xff] %vm321_vm2, %v320_v11 }
 0x30d   :  { %335 = dma.vmem_to_hbm [thread:$0]  %s331_s22, 384, %s333_s12, [#allocation4]  }
 0x30e   :  { %587 = dma.done.wait [#allocation4], 384  }
 0x30f   :  { %588 = vsyncadd [#allocation4], 4294966912 }
 0x310   :  { %340 = vsyncpa [#allocation3], 1 }
 0x311   :  { %341 = vsyncpa [#allocation6], 1 }
 0x312   :  { %342 = vsyncpa [#allocation9], 1 }
 0x313   :  { %343 = vsyncpa [#allocation12], 1 }
 0x314   :  { %344 = vsyncpa [#allocation4], 1 }

</bundles_post_ra>
